<compile_context>
chip_gen: v6e
topology: v6e:2x2x1
jax: 0.10.0
libtpu: 0.0.40
codegen_flags: <defaults>
</compile_context>

<pallas_src>
import jax
import jax.numpy as jnp
import numpy as np
from jax.experimental import pallas as pl
from jax.experimental.pallas import tpu as pltpu

BN_EPS = 1e-5


def _pick_m_tile(m, target):
    """Largest multiple-of-16 divisor of m that is <= target, else m itself.

    TM must be a multiple of 16 so the packed row-pair tile (TM//2 rows)
    satisfies the (8, 128) BlockSpec divisibility constraint; TM == m is always
    legal (block dims equal to full array dims)."""
    t = max(1, min(target, m))
    start = t - (t % 16)
    for cand in range(start, 15, -16):
        if m % cand == 0:
            return cand
    return m


def _vmem_limit(block_bytes):
    """Size the scoped-VMEM request to actual need, capped at 48 MiB (v7x)."""
    return int(min(max(6 * int(block_bytes), 8 * 1024 * 1024), 48 * 1024 * 1024))


def conv_stats_kernel(p_ref, w_ref, conv_ref, stats_ref):
    """Per-M-tile conv-as-matmul (bf16 in, f32 acc on the MXU).

    p_ref:     (TM//2, 2K)  bf16  row-pair packed im2col patches
    w_ref:     (2K, 2C)     bf16  block-diagonal weights -> packed output
    conv_ref:  (TM//2, 2C)  bf16  lane-dense (128-lane) conv intermediate
    stats_ref: (1, 2, 2C)   f32   per-tile [sum; sum of squares] (packed lanes)
    """
    acc = jnp.dot(p_ref[...], w_ref[...], preferred_element_type=jnp.float32)
    conv_ref[...] = acc.astype(jnp.bfloat16)
    s = jnp.sum(acc, axis=0, keepdims=True)            # (1, 2C)
    ss = jnp.sum(acc * acc, axis=0, keepdims=True)     # (1, 2C)
    stats_ref[...] = jnp.concatenate([s, ss], axis=0)[None, ...]   # one store


def bn_relu_pool_kernel(x_ref, scale_ref, shift_ref, o_ref):
    """Fused BatchNorm affine + ReLU + MaxPool2d(kernel=3, stride=2, pad=1).

    x_ref holds the bf16 conv output packed as (1, Ho, Wo//2, 2*C): even-w
    channels in lanes [0, C), odd-w channels in lanes [C, 2C) -> lane-dense
    loads; the stride-2 W decimation is a static lane-half split.  Pool
    padding uses 0, exact because the input is post-ReLU (>= 0).
    """
    x = x_ref[...].astype(jnp.float32)
    y = jnp.maximum(x * scale_ref[...] + shift_ref[...], 0.0)   # (1, Ho, Wp, 2C)

    c = o_ref.shape[3]
    hp, wp = o_ref.shape[1], o_ref.shape[2]

    # ---- W direction: window {2q-1, 2q, 2q+1} ----
    ev = y[..., :c]                                   # w = 2q      (even columns)
    od = y[..., c:]                                   # w = 2q + 1  (odd columns)
    od_l = pltpu.roll(od, shift=1, axis=2)            # sublane roll: od_l[q] = od[q-1]
    qpos = jax.lax.broadcasted_iota(jnp.int32, od.shape, 2)
    od_l = jnp.where(qpos == 0, 0.0, od_l)            # left pad column -> 0
    wmax = jnp.maximum(jnp.maximum(ev, od), od_l)     # (1, Ho, Wp, C)

    # ---- H direction: window {2p-1, 2p, 2p+1} ----
    # pltpu.roll only rotates the (sublane, lane) dims; H (axis=1) sits above
    # them, so the 2p-1 neighbor uses a one-row zero concat (one VMEM copy).
    wr = wmax.reshape(1, hp, 2, wp, c)                # split H into (even, odd) rows
    r0 = wr[:, :, 0, :, :]                            # rows 2p
    r1 = wr[:, :, 1, :, :]                            # rows 2p + 1
    if hp > 1:
        r1_up = jnp.concatenate(
            [jnp.zeros_like(r1[:, :1]), r1[:, :-1]], axis=1)   # rows 2p - 1
    else:
        r1_up = jnp.zeros_like(r1)
    o_ref[...] = jnp.maximum(jnp.maximum(r0, r1), r1_up)


def stem_forward(x_nchw, conv_w, conv_b, gamma, beta, *, m_tile=4096,
                 out_layout="NCHW"):
    """Stem forward. x_nchw: (N, Cin, H, W) f32 -> (N, Cout, Hp, Wp) f32.

    conv_b is accepted for API parity with nn.Conv2d but is mathematically
    unused: under training-mode BatchNorm the conv bias cancels exactly.
    Set out_layout="NHWC" to skip the final transpose when the consumer is
    another TPU kernel.
    """
    del conv_b  # cancels under batch-stats normalization

    N, Cin, H, W = x_nchw.shape
    Cout, _, KH, KW = conv_w.shape
    stride, pad = 2, 3
    Ho = (H + 2 * pad - KH) // stride + 1
    Wo = (W + 2 * pad - KW) // stride + 1
    assert Ho % 2 == 0 and Wo % 2 == 0, "pool packing assumes even conv output H/W"
    Hp, Wp = Ho // 2, Wo // 2
    M = N * Ho * Wo
    K = KH * KW * Cin
    M2 = M // 2
    Cp = 2 * Cout

    # ---- glue (XLA): NHWC, zero-pad, bf16 cast BEFORE im2col, no K padding ----
    x = jnp.transpose(x_nchw, (0, 2, 3, 1)).astype(jnp.bfloat16)
    xp = jnp.pad(x, ((0, 0), (pad, pad), (pad, pad), (0, 0)))
    cols = []
    for kh in range(KH):
        for kw in range(KW):
            cols.append(xp[:, kh:kh + stride * Ho:stride,
                           kw:kw + stride * Wo:stride, :])
    # (N, Ho, Wo, K) -> row-pair packed (M/2, 2K): free row-major re-view.
    patches = jnp.concatenate(cols, axis=-1).reshape(M2, 2 * K)

    # Block-diagonal weights so the matmul emits a 128-lane packed output
    # row = [conv(2m) | conv(2m+1)]  (no in-kernel relayout needed).
    w2d = jnp.transpose(conv_w, (2, 3, 1, 0)).reshape(K, Cout).astype(jnp.bfloat16)
    wz = jnp.zeros((K, Cout), jnp.bfloat16)
    w_blk = jnp.concatenate(
        [jnp.concatenate([w2d, wz], axis=1),
         jnp.concatenate([wz, w2d], axis=1)], axis=0)          # (2K, 2Cout)

    # ---- Pallas kernel 1: tiled conv matmul + partial BN statistics ----
    TM = _pick_m_tile(M, m_tile)
    TM2 = TM // 2
    n_tiles = M // TM

    k1_block_bytes = (TM2 * 2 * K + 2 * K * Cp + TM2 * Cp) * 2 + 2 * Cp * 4
    conv_out, stats = pl.pallas_call(
        conv_stats_kernel,
        out_shape=(
            jax.ShapeDtypeStruct((M2, Cp), jnp.bfloat16),
            jax.ShapeDtypeStruct((n_tiles, 2, Cp), jnp.float32),
        ),
        grid=(n_tiles,),
        in_specs=[
            pl.BlockSpec((TM2, 2 * K), lambda i: (i, 0)),
            pl.BlockSpec((2 * K, Cp), lambda i: (0, 0)),
        ],
        out_specs=[
            pl.BlockSpec((TM2, Cp), lambda i: (i, 0)),
            pl.BlockSpec((1, 2, Cp), lambda i: (i, 0, 0)),
        ],
        compiler_params=pltpu.CompilerParams(
            dimension_semantics=("parallel",),
            vmem_limit_bytes=_vmem_limit(k1_block_bytes),
        ),
    )(patches, w_blk)

    # ---- global BN batch statistics + fused affine (tiny, done in XLA) ----
    tot = jnp.sum(stats, axis=0)                       # (2, 2*Cout) f32
    total = tot[0, :Cout] + tot[0, Cout:]              # unpack even/odd lane halves
    total_sq = tot[1, :Cout] + tot[1, Cout:]
    mean = total / M
    var = jnp.maximum(total_sq / M - mean * mean, 0.0)  # biased variance (train mode)
    scale = gamma * jax.lax.rsqrt(var + BN_EPS)
    shift = beta - mean * scale
    scale2 = jnp.concatenate([scale, scale]).reshape(1, Cp)
    shift2 = jnp.concatenate([shift, shift]).reshape(1, Cp)

    # ---- Pallas kernel 2: fused BN-apply + ReLU + MaxPool (lane-dense bf16) ----
    x_packed = conv_out.reshape(N, Ho, Wp, Cp)          # free row-major re-view
    k2_block_bytes = (Ho * Wp * Cp) * 2 + (Hp * Wp * Cout) * 4 + 4 * (Ho * Wp * Cp) * 4
    pooled = pl.pallas_call(
        bn_relu_pool_kernel,
        out_shape=jax.ShapeDtypeStruct((N, Hp, Wp, Cout), jnp.float32),
        grid=(N,),
        in_specs=[
            pl.BlockSpec((1, Ho, Wp, Cp), lambda n: (n, 0, 0, 0)),
            pl.BlockSpec((1, Cp), lambda n: (0, 0)),
            pl.BlockSpec((1, Cp), lambda n: (0, 0)),
        ],
        out_specs=pl.BlockSpec((1, Hp, Wp, Cout), lambda n: (n, 0, 0, 0)),
        compiler_params=pltpu.CompilerParams(
            dimension_semantics=("parallel",),
            vmem_limit_bytes=_vmem_limit(k2_block_bytes),
        ),
    )(x_packed, scale2, shift2)

    if out_layout == "NHWC":
        return pooled
    return jnp.transpose(pooled, (0, 3, 1, 2))           # NHWC -> NCHW (PyTorch parity)


def _stem_reference(x, w, b, gamma, beta, eps=BN_EPS):
    """Pure NumPy float64 reference of the PyTorch module in train mode."""
    x = np.asarray(x, np.float64)
    w = np.asarray(w, np.float64)
    b = np.asarray(b, np.float64)
    g = np.asarray(gamma, np.float64)
    bt = np.asarray(beta, np.float64)
    N, Cin, H, W = x.shape
    Cout, _, KH, KW = w.shape
    s, p = 2, 3
    Ho = (H + 2 * p - KH) // s + 1
    Wo = (W + 2 * p - KW) // s + 1
    xp = np.zeros((N, Cin, H + 2 * p, W + 2 * p))
    xp[:, :, p:p + H, p:p + W] = x
    conv = np.zeros((N, Cout, Ho, Wo))
    for i in range(Ho):
        for j in range(Wo):
            patch = xp[:, :, s * i:s * i + KH, s * j:s * j + KW]
            conv[:, :, i, j] = np.einsum("ncij,ocij->no", patch, w) + b
    mean = conv.mean(axis=(0, 2, 3), keepdims=True)
    var = conv.var(axis=(0, 2, 3), keepdims=True)
    y = (conv - mean) / np.sqrt(var + eps) * g.reshape(1, -1, 1, 1) + bt.reshape(1, -1, 1, 1)
    y = np.maximum(y, 0.0)
    Hp = (Ho + 2 - 3) // 2 + 1
    Wp = (Wo + 2 - 3) // 2 + 1
    yp = np.full((N, Cout, Ho + 2, Wo + 2), -np.inf)
    yp[:, :, 1:1 + Ho, 1:1 + Wo] = y
    out = np.zeros((N, Cout, Hp, Wp))
    for i in range(Hp):
        for j in range(Wp):
            out[:, :, i, j] = yp[:, :, 2 * i:2 * i + 3, 2 * j:2 * j + 3].max(axis=(2, 3))
    return out


if __name__ == "__main__":
    key = jax.random.PRNGKey(0)
    k_w, k_b, k_x, k_g, k_be = jax.random.split(key, 5)

    # small shapes consistent with the module: NCHW input, 3 -> 64 channels
    N, Cin, H, W = 2, 3, 16, 16
    Cout, KH, KW = 64, 7, 7

    x = jax.random.normal(k_x, (N, Cin, H, W), jnp.float32)
    fan_in = Cin * KH * KW
    conv_w = jax.random.normal(k_w, (Cout, Cin, KH, KW), jnp.float32) * (2.0 / fan_in) ** 0.5
    conv_b = jax.random.normal(k_b, (Cout,), jnp.float32) * 0.1
    gamma = 1.0 + 0.1 * jax.random.normal(k_g, (Cout,), jnp.float32)
    beta = 0.1 * jax.random.normal(k_be, (Cout,), jnp.float32)

    # m_tile=64 forces a multi-tile grid (M = 2*8*8 = 128 -> 2 M-tiles), so the
    # cross-tile BatchNorm statistics path is exercised at this toy size.
    out = stem_forward(x, conv_w, conv_b, gamma, beta, m_tile=64)
    out = jax.block_until_ready(out)
    assert out.shape == (N, Cout, 4, 4), out.shape

    ref = _stem_reference(x, conv_w, conv_b, gamma, beta)
    err = float(np.max(np.abs(np.asarray(out, np.float64) - ref)))
    assert err < 0.1, f"max abs error vs reference too large: {err}"

    print("KERNEL_OK")
</pallas_src>

<mosaic_0001>
module attributes {stable_mosaic.version = 11 : i64} {
  func.func @conv_stats_kernel(%arg0: i32, %arg1: memref<32x294xbf16, #tpu.memory_space<vmem>>, %arg2: memref<294x128xbf16, #tpu.memory_space<vmem>>, %arg3: memref<32x128xbf16, #tpu.memory_space<vmem>>, %arg4: memref<1x2x128xf32, #tpu.memory_space<vmem>>) attributes {dimension_semantics = [#tpu.dimension_semantics<parallel>], iteration_bounds = array<i64: 2>, scalar_prefetch = 0 : i64, scratch_operands = 0 : i64, tpu.core_type = #tpu.core_type<tc>, window_params = [{transform_indices = @transform_0, window_bounds = array<i64: 32, 294>}, {pipeline_mode = #tpu.pipeline_mode<synchronous>, transform_indices = @transform_1, window_bounds = array<i64: 294, 128>}, {transform_indices = @transform_2, window_bounds = array<i64: 32, 128>}, {transform_indices = @transform_3, window_bounds = array<i64: 1, 2, 128>}]} {
    %c0 = arith.constant 0 : index
    %c0_0 = arith.constant 0 : index
    %0 = vector.load %arg1[%c0, %c0_0] : memref<32x294xbf16, #tpu.memory_space<vmem>>, vector<32x294xbf16>
    %c0_1 = arith.constant 0 : index
    %c0_2 = arith.constant 0 : index
    %1 = vector.load %arg2[%c0_1, %c0_2] : memref<294x128xbf16, #tpu.memory_space<vmem>>, vector<294x128xbf16>
    %cst = arith.constant dense<0.000000e+00> : vector<32x128xf32>
    %2 = tpu.matmul %0, %1, %cst {dimension_numbers = #tpu.dot_dimension_numbers<[1], [0], [0], [1], [0, 0, 1, 1], [], []>} : vector<32x294xbf16>, vector<294x128xbf16>, vector<32x128xf32> -> vector<32x128xf32>
    %3 = arith.truncf %2 : vector<32x128xf32> to vector<32x128xbf16>
    %c0_3 = arith.constant 0 : index
    %c0_4 = arith.constant 0 : index
    %4 = vector.load %arg3[%c0_3, %c0_4] : memref<32x128xbf16, #tpu.memory_space<vmem>>, vector<32x128xbf16>
    tpu.vector_store %arg3[%c0_3, %c0_4], %3 {strides = array<i32>} : memref<32x128xbf16, #tpu.memory_space<vmem>>, vector<32x128xbf16>,
    %cst_5 = arith.constant dense<0.000000e+00> : vector<128xf32>
    %5 = vector.multi_reduction <add>, %2, %cst_5 [0] : vector<32x128xf32> to vector<128xf32>
    %6 = vector.shape_cast %5 : vector<128xf32> to vector<1x128xf32>
    %7 = arith.mulf %2, %2 : vector<32x128xf32>
    %cst_6 = arith.constant dense<0.000000e+00> : vector<128xf32>
    %8 = vector.multi_reduction <add>, %7, %cst_6 [0] : vector<32x128xf32> to vector<128xf32>
    %9 = vector.shape_cast %8 : vector<128xf32> to vector<1x128xf32>
    %10 = tpu.concatenate %6, %9 in 0 : vector<1x128xf32>, vector<1x128xf32> -> vector<2x128xf32>
    %11 = vector.shape_cast %10 : vector<2x128xf32> to vector<1x2x128xf32>
    %c0_7 = arith.constant 0 : index
    %c0_8 = arith.constant 0 : index
    %c0_9 = arith.constant 0 : index
    %12 = vector.load %arg4[%c0_7, %c0_8, %c0_9] : memref<1x2x128xf32, #tpu.memory_space<vmem>>, vector<1x2x128xf32>
    tpu.vector_store %arg4[%c0_7, %c0_8, %c0_9], %11 {strides = array<i32>} : memref<1x2x128xf32, #tpu.memory_space<vmem>>, vector<1x2x128xf32>,
    return
  }
  func.func @transform_0(%arg0: i32) -> (i32, i32) {
    %c0_i32 = arith.constant 0 : i32
    %c0_i32_0 = arith.constant 0 : i32
    return %arg0, %c0_i32 : i32, i32
  }
  func.func @transform_1(%arg0: i32) -> (i32, i32) {
    %c0_i32 = arith.constant 0 : i32
    %c0_i32_0 = arith.constant 0 : i32
    %c0_i32_1 = arith.constant 0 : i32
    return %c0_i32, %c0_i32_0 : i32, i32
  }
  func.func @transform_2(%arg0: i32) -> (i32, i32) {
    %c0_i32 = arith.constant 0 : i32
    %c0_i32_0 = arith.constant 0 : i32
    return %arg0, %c0_i32 : i32, i32
  }
  func.func @transform_3(%arg0: i32) -> (i32, i32, i32) {
    %c0_i32 = arith.constant 0 : i32
    %c0_i32_0 = arith.constant 0 : i32
    %c0_i32_1 = arith.constant 0 : i32
    return %arg0, %c0_i32, %c0_i32_0 : i32, i32, i32
  }
}

</mosaic_0001>

<bundles_post_ra>
// kernel: tpu_custom_call.1
= control target key start
LH: loop header
LB: loop body
LE: loop exit
PB: predicated region body
PF: predicated region fallthrough
CT: control target
= control target key end

     0   :  { %9 = vsyncpa [#allocation3], 0  ;;  %s1307_s0 = inlined_call_operand.hbm [shape: bf16[64,294], index: 0, kind: input, shape index: {}]   ;;  %s1308_s1 = inlined_call_operand.hbm [shape: bf16[294,128], index: 1, kind: input, shape index: {}]   ;;  %s1309_s2 = inlined_call_operand.hbm [shape: bf16[64,128], index: 2, kind: output, shape index: {0}]   ;;  %s1310_s3 = inlined_call_operand.hbm [shape: f32[2,2,128], index: 3, kind: output, shape index: {1}]  }
   0x1   :  { %11 = vsyncpa [#allocation3 + $0x1], 0 }
   0x2   :  { %12 = vsyncpa [#allocation6], 0 }
   0x3   :  { %13 = vsyncpa [#allocation4], 0 }
   0x4   :  { %15 = vsyncpa [#allocation4 + $0x1], 0 }
   0x5   :  { %16 = vsyncpa [#allocation9], 0 }
   0x6   :  { %18 = vsyncpa [#allocation9 + $0x1], 0  ;;  %s1097_s12 = smov 0   ;;  %s1099_s13 = smov 0  }
   0x7   :  { %s1101_s14 = smov 0   ;;  %s1103_s15 = smov 0  }
   0x8 LB: > { %s1118_s16 = sadd.s32 4294967295, %s1065_s15   ;;  %s706_s17 = sadd.s32 4294967294, %s1065_s15   ;;  %s1065_s15 = sphi %s1103_s15, %s1332_s15   ;;  %s1061_s14 = sphi %s1101_s14, %s1331_s14   ;;  %s1057_s13 = sphi %s1099_s13, %s1330_s13   ;;  %s1053_s12 = sphi %s1097_s12, %s1329_s12  }
   0x9   : > { %p44_p0 = scmp.ne.s32.totalorder %s1057_s13, %s1053_s12  ;;  %p1311_p1 = scmp.eq.s32.totalorder %s1118_s16, 0 }
   0xa   : > { %p95_p3 = scmp.eq.s32.totalorder %s706_s17, 1  ;;  %p707_p5 = scmp.ge.s32.totalorder %s1065_s15, 1 }
   0xb   : > { %p1127_p4 = por %p1311_p1, %p44_p0  ;;  %p128_p7 = scmp.lt.s32.totalorder %s1065_s15, 3 }
   0xc   : > { %p1132_p6 = por %p95_p3, %p44_p0  ;;  %s1067_s21 = smov [#allocation5]  }
   0xd   : > { %s1315_s18 = scalar_select %p1127_p4, 1, 0 }
   0xe   : > { %s1316_s19 = scalar_select %p1132_p6, 1, 0 }
   0xf   : > { %p1137_p8 = pnand %p707_p5, %p128_p7  ;;  %s140_s22 = sshll.u32 %s1067_s21, 4  ;;  %s141_s22 = int_to_ptr.vmem [resolvable:$true] %s140_s22 }
  0x10   : > { %s1151_s24 = sadd.s32 1, %s1065_s15   ;;  %s31_s25 = sadd.s32 1, %s1061_s14 }
  0x11   : > { %s1317_s20 = scalar_select %p1137_p8, 1, 0 }
  0x12   : > { %p828_p9 = pneg %p1137_p8  ;;  %s28_s26 = ssub.s32 %s1065_s15, %s1151_s24 }
  0x13   : > { %s924_s27 = scalar_lea.vmem %s141_s22, 2368  ;;  %p932_p5 = scmp.lt.s32.totalorder %s141_s22, %s141_s22 }
  0x14   : > { %p1146_p11 = pnand %p828_p9, %p1311_p1  ;;  %p925_p13 = scmp.ne.s32.totalorder %s141_s22, %s924_s27 }
  0x15   : > { %p933_p7 = scmp.lt.s32.totalorder %s924_s27, %s924_s27 }
  0x16   : > { %p915_p12 = pneg %p1146_p11 }
  0x17   : > { %p934_p10 = por %p933_p7, %p932_p5 }
  0x18   : > { %p927_p0 = pnand %p925_p13, %p915_p12 }
  0x1a   : > { %p928_p3 = pneg %p927_p0 }
  0x1c   : > { %p935_p2 = pnand %p934_p10, %p928_p3 }
  0x1e   : > { %938 = shalt.err (!%p935_p2)
}
  0x1f   : > { %s1068_s28 = smov 64   ;;  %s1069_s29 = smov 4  }
  0x20   : > { %831 = dma.hbm_to_vmem [thread:$0]  (!%p1146_p11), %s1308_s1, 2368, %s141_s22, [#allocation6], %s1068_s28, %s1068_s28, %s1069_s29  }
  0x21   : > { %p29_p9 = scmp.eq.s32.totalorder %s28_s26, 0  ;;  %p38_p12 = scmp.ne.s32.totalorder %s1061_s14, %s1057_s13 }
  0x22   : > { %p39_p10 = scmp.eq.s32.totalorder %s1065_s15, 0  ;;  %p844_p2 = scmp.lt.s32.totalorder %s1065_s15, 2 }
  0x23   : > { %s1168_s5 = scalar_select %p29_p9, %s1061_s14, %s31_s25  }
  0x24   : > { %p40_p13 = por %p39_p10, %p38_p12  ;;  %p1319_p0 = scmp.eq.s32.totalorder %s1118_s16, 1 }
  0x25   : > { %s154_s7 = sand.u32 1, %s1061_s14   ;;  %s816_s8 = smul.u32 768, %s1065_s15 }
  0x26   : > { %p1172_p3 = por %p1319_p0, %p38_p12  ;;  %s815_s9 = smul.u32 48, %s154_s7 }
  0x27   : > { %s1181_s17 = scalar_lea.hbm %s1307_s0, %s816_s8  ;;  %p1183_p11 = pnand %p844_p2, %p40_p13 }
  0x28   : > { %s1320_s6 = scalar_select %p1172_p3, 1, 0 }
  0x29   : > { %s158_s22 = scalar_lea.vmem [#allocation2], %s815_s9  ;;  %s1189_s25 = scalar_lea.sflag [#allocation3], %s154_s7 }
  0x2a   : > { %s166_s23 = sshll.u32 %s158_s22, 4  ;;  %s939_s26 = scalar_lea.hbm %s1181_s17, 768  ;;  %s1187_s23 = int_to_ptr.vmem [resolvable:$true] %s166_s23 }
  0x2b   : > { %p940_p5 = scmp.ne.s32.totalorder %s1181_s17, %s939_s26  ;;  %p941_p7 = pneg %p1183_p11 }
  0x2c   : > { %s944_s29 = scalar_lea.hbm %s1307_s0, 1536  ;;  %p945_p10 = scmp.lt.s32.totalorder %s1181_s17, %s1307_s0 }
  0x2d   : > { %p942_p9 = pnand %p941_p7, %p940_p5  ;;  %p946_p2 = scmp.lt.s32.totalorder %s944_s29, %s939_s26 }
  0x2f   : > { %p943_p12 = pneg %p942_p9  ;;  %p947_p13 = por %p946_p2, %p945_p10 }
  0x31   : > { %p948_p0 = pnand %p947_p13, %p943_p12 }
  0x33   : > { %951 = shalt.err (!%p948_p0)
}
  0x34   : > { %s952_s7 = scalar_lea.vmem %s1187_s23, 768  ;;  %s1070_s8 = smov [#allocation2]  }
  0x35   : > { %p953_p1 = scmp.ne.s32.totalorder %s1187_s23, %s952_s7  ;;  %s957_s9 = sshll.u32 %s1070_s8, 4  ;;  %s958_s9 = int_to_ptr.vmem [resolvable:$false] %s957_s9 }
  0x36   : > { %s959_s10 = scalar_lea.vmem %s958_s9, 1536  ;;  %p960_p9 = scmp.lt.s32.totalorder %s1187_s23, %s958_s9 }
  0x37   : > { %p955_p6 = pnand %p953_p1, %p941_p7  ;;  %p961_p3 = scmp.lt.s32.totalorder %s959_s10, %s952_s7 }
  0x39   : > { %p956_p5 = pneg %p955_p6  ;;  %p962_p4 = por %p961_p3, %p960_p9 }
  0x3b   : > { %p963_p8 = pnand %p962_p4, %p956_p5 }
  0x3d   : > { %966 = shalt.err (!%p963_p8)
}
  0x3e   : > { %s1071_s11 = smov 192   ;;  %s1072_s22 = smov 12  }
  0x3f   : > { %835 = dma.hbm_to_vmem [thread:$0]  (!%p1183_p11), %s1181_s17, 768, %s1187_s23, %s1189_s25, %s1071_s11, %s1071_s11, %s1072_s22  }
  0x40   : > { %p1322_p1 = scmp.ne.s32.totalorder %s1317_s20, 0 }
  0x41   : > { %s1213_s26 = sand.u32 (!%p1322_p1), 1, %s1057_s13   ;;  %p1323_p4 = scmp.ne.s32.totalorder (!%p1322_p1), %s1315_s18, 0 }
  0x42   : > { %178 = sbr.rel (%p1322_p1) target bundleno = 359 (0x167), region = 28  ;;  %s181_s28 = scalar_lea.sflag (!%p1322_p1), [#allocation3], %s1213_s26 }
  0x43   : > { %s817_s27 = smul.u32 (!%p1322_p1), 48, %s1213_s26 }
  0x45   : > { %s1217_s29 = scalar_lea.vmem (!%p1322_p1), [#allocation2], %s817_s27 }
  0x47   : > { %1036 = dma.done.wait (%p1323_p4), %s181_s28, 768  }
  0x48   : > { %1038 = vsyncadd (%p1323_p4), %s181_s28, 4294966528  ;;  %p1324_p6 = scmp.eq.s32.totalorder %s1118_s16, 0 }
  0x4a   : > { %1040 = dma.done.wait (%p1324_p6), [#allocation6], 2368   ;;  %p1325_p8 = pmov %p1324_p6 }
  0x4b   : > { %v886_v0 = vld [vmem:[#allocation5 + $0x78] sm:$0xff]   ;;  %v888_v2 = vld [vmem:[#allocation5 + $0x70] sm:$0xff]   ;;  %v890_v4 = vld [vmem:[#allocation5 + $0x68] sm:$0xff]   ;;  %vm412_vm0 = vcmask 1042432   ;;  %vm405_vm1 = vcmask 310272   ;;  %s715_s18 = sshll.u32 %s1213_s26, 4 }
  0x4c   : > { %1042 = vsyncadd (%p1325_p8), [#allocation6], 4294964928  ;;  %v887_v1 = vld [vmem:[#allocation5 + $0x38] sm:$0xff]   ;;  %771 = vmatprep.subr.bf16.mxu0 %v886_v0  ;;  %v889_v3 = vld [vmem:[#allocation5 + $0x30] sm:$0xff]   ;;  %s208_s20 = scalar_lea.vmem [#allocation7], %s715_s18  ;;  %s759_s21 = sshll.u32 %s1118_s16, 8 }
  0x4d   : > { %772 = vmatpush3.bf16.msra.mxu0 %v887_v1  ;;  %v891_v5 = vld [vmem:[#allocation5 + $0x28] sm:$0xff]   ;;  %v892_v6 = vld [vmem:[#allocation5 + $0x60] sm:$0xff]   ;;  %v894_v8 = vld [vmem:[#allocation5 + $0x58] sm:$0xff]   ;;  %s578_s17 = sshll.u32 %s208_s20, 4  ;;  %s1240_s30 = scalar_lea.hbm %s1309_s2, %s759_s21  ;;  %s1235_s17 = int_to_ptr.vmem [resolvable:$true] %s578_s17 }
  0x4e   : > { %773 = vmatprep.subr.bf16.mxu0 %v888_v2  ;;  %v893_v7 = vld [vmem:[#allocation5 + $0x20] sm:$0xff]   ;;  %v897_v9 = vld [vmem:[#allocation5 + $0x90] ss:$0 sps:$4 sm:$0x77]   ;;  %v900_v11 = vld [vmem:[#allocation5 + $0x88] sm:$0xff]   ;;  %s560_s4 = scalar_lea.sflag [#allocation4], %s1213_s26 }
  0x4f   : > { %814 = vmatprep.subr.msk.bf16.mxu1 %vm412_vm0, %v897_v9  ;;  %v414_v10 = vsel %vm412_vm0, %v897_v9, 0  ;;  %v895_v12 = vld [vmem:[#allocation5 + $0x18] sm:$0xff]   ;;  %v896_v13 = vld [vmem:[#allocation5 + $0x50] sm:$0xff]   ;;  %v903_v14 = vld [vmem:[#allocation5 + $0x80] sm:$0xff]   ;;  %s967_s7 = scalar_lea.vmem %s1235_s17, 256  ;;  %p1326_p11 = scmp.ne.s32.totalorder %s1320_s6, 0 }
  0x50   : > { %805 = vmatpush3.bf16.msra.mxu1 %v414_v10  ;;  %v898_v15 = vld [vmem:[#allocation5 + $0x10] sm:$0xff]   ;;  %v899_v16 = vld [vmem:[#allocation5 + $0x48] sm:$0xff]   ;;  %v902_v21 = vld [vmem:[#allocation5 + $0x40] sm:$0xff]   ;;  %p968_p3 = scmp.ne.s32.totalorder %s1235_s17, %s967_s7  ;;  %s1073_s8 = smov [#allocation7]  }
  0x51   : > { %774 = vmatpush3.bf16.msra.mxu0 %v889_v3  ;;  %806 = vmatprep.subr.bf16.mxu1 %v900_v11  ;;  %v907_v17 = vld [vmem:[%s1217_s29 + $0x4] ss:$12 sps:$4 sm:$0xff]   ;;  %v908_v18 = vld [vmem:[%s1217_s29 + $0x8] ss:$12 sps:$4 sm:$0xff]   ;;  %v909_v19 = vld [vmem:[%s1217_s29 + $0x20] ss:$12 sps:$4 sm:$0xff]  }
  0x52   : > { %775 = vmatprep.subr.bf16.mxu0 %v890_v4  ;;  %448 = vmatprep.mubr.bf16.mxu0 %v907_v17  ;;  %v901_v20 = vld [vmem:[#allocation5 + $0x8] sm:$0xff]   ;;  %v904_v22 = vld [vmem:[#allocation5] sm:$0xff]   ;;  %p969_p7 = pnand %p968_p3, %p1326_p11  ;;  %s971_s9 = sshll.u32 %s1073_s8, 4  ;;  %s972_s9 = int_to_ptr.vmem [resolvable:$false] %s971_s9 }
  0x53   : > { %810 = vmatprep.mubr.msk.bf16.mxu1 %vm405_vm1, %v908_v18  ;;  %v905_v23 = vld [vmem:[%s1217_s29] ss:$12 sps:$4 sm:$0xff]   ;;  %v910_v24 = vld [vmem:[%s1217_s29 + $0x1c] ss:$12 sps:$4 sm:$0xff]   ;;  %v912_v25 = vld [vmem:[%s1217_s29 + $0x18] ss:$12 sps:$4 sm:$0xff]   ;;  %p974_p10 = scmp.lt.s32.totalorder %s1235_s17, %s972_s9 }
  0x54   : > { %807 = vmatpush3.bf16.msra.mxu1 %v900_v11  ;;  %p970_p12 = pneg %p969_p7  ;;  %s973_s10 = scalar_lea.vmem %s972_s9, 512 }
  0x55   : > { %776 = vmatpush3.bf16.msra.mxu0 %v891_v5  ;;  %808 = vmatprep.subr.bf16.mxu1 %v903_v14  ;;  %p975_p2 = scmp.lt.s32.totalorder %s973_s10, %s967_s7 }
  0x56   : > { %777 = vmatprep.subr.bf16.mxu0 %v892_v6 }
  0x57   : > { %p976_p13 = por %p975_p2, %p974_p10 }
  0x58   : > { %809 = vmatpush3.bf16.msra.mxu1 %v903_v14 }
  0x59   : > { %778 = vmatpush3.bf16.msra.mxu0 %v893_v7  ;;  %p977_p0 = pnand %p976_p13, %p970_p12 }
  0x5a   : > { %779 = vmatprep.subr.bf16.mxu0 %v894_v8 }
  0x5b   : > { %811 = vmatmul.mubr.msk.bf16.vlgmr.msra.gmra.mxu1 %vm405_vm1, %v909_v19 }
  0x5d   : > { %780 = vmatpush3.bf16.msra.mxu0 %v895_v12 }
  0x5e   : > { %781 = vmatprep.subr.bf16.mxu0 %v896_v13 }
  0x61   : > { %782 = vmatpush3.bf16.msra.mxu0 %v898_v15 }
  0x62   : > { %783 = vmatprep.subr.bf16.mxu0 %v899_v16 }
  0x65   : > { %784 = vmatpush3.bf16.msra.mxu0 %v901_v20 }
  0x66   : > { %785 = vmatprep.subr.bf16.mxu0 %v902_v21 }
  0x69   : > { %786 = vmatpush3.bf16.msra.mxu0 %v904_v22 }
  0x6c   : > { %449 = vmatmul.mubr.bf16.vlgmr.msra.gmra.mxu0 %v905_v23 }
  0x6d   : > { %456 = vmatprep.mubr.bf16.mxu0 %v910_v24 }
  0x74   : > { %457 = vmatmul.mubr.bf16.gmra.mxu0 %v912_v25 }
 0x11b   : > { %v812_v26 = vpop.f32.mrf.mxu1 }
 0x11d   : > { %v499_v28 = vpop.f32.mrf.mxu1 }
 0x11f   : > { %v813_v31 = vpop.f32.mrf.mxu1 }
 0x121   : > { %v502_v35 = vpop.f32.mrf.mxu1 }
 0x12c   : > { %v787_v27 = vpop.f32.mrf.mxu0 }
 0x12e   : > { %v788_v29 = vpop.f32.mrf.mxu0 }
 0x12f   : > { %v789_v32 = vadd.f32 %v788_v29, %v787_v27 }
 0x130   : > { %v790_v30 = vpop.f32.mrf.mxu0 }
 0x131   : > { %v500_v37 = vadd.f32 %v789_v32, %v499_v28 }
 0x132   : > { %v791_v33 = vpop.f32.mrf.mxu0 }
 0x133   : > { %v792_v34 = vadd.f32 %v791_v33, %v790_v30  ;;  %v543_v46 = vmul.f32 %v500_v37, %v500_v37 }
 0x134   : > { %v793_v36 = vpop.f32.mrf.mxu0 }
 0x135   : > { %v503_v38 = vadd.f32 %v792_v34, %v502_v35 }
 0x136   : > { %v794_v39 = vpop.f32.mrf.mxu0 }
 0x137   : > { %v763_v40 = vpack.c.bf16 %v503_v38, %v500_v37  ;;  %v795_v41 = vadd.f32 %v794_v39, %v793_v36  ;;  %v544_v43 = vmul.f32 %v503_v38, %v503_v38  ;;  %v534_v47 = vadd.f32 %v503_v38, %v500_v37 }
 0x138   : > { %v796_v42 = vpop.f32.mrf.mxu0 }
 0x139   : > { %764 = vst [vmem:[%s208_s20] sm:$0xff] %v763_v40   ;;  %v508_v44 = vadd.f32 %v812_v26, %v795_v41  ;;  %v547_v50 = vadd.f32 %v544_v43, %v543_v46 }
 0x13a   : > { %v797_v45 = vpop.f32.mrf.mxu0 }
 0x13b   : > { %v545_v48 = vmul.f32 %v508_v44, %v508_v44  ;;  %v798_v49 = vadd.f32 %v797_v45, %v796_v42  ;;  %v535_v51 = vadd.f32 %v534_v47, %v508_v44 }
 0x13d   : > { %v511_v52 = vadd.f32 %v813_v31, %v798_v49  ;;  %v548_v53 = vadd.f32 %v547_v50, %v545_v48 }
 0x13f   : > { %v768_v54 = vpack.c.bf16 %v511_v52, %v508_v44  ;;  %v536_v55 = vadd.f32 %v535_v51, %v511_v52  ;;  %v546_v56 = vmul.f32 %v511_v52, %v511_v52 }
 0x141   : > { %770 = vst [vmem:[%s208_s20 + $0x8] sm:$0xff] %v768_v54   ;;  %v537_v57 = vrot.slane %v536_v55, 4  ;;  %v549_v58 = vadd.f32 %v548_v53, %v546_v56 }
 0x142   : > { %980 = shalt.err (!%p977_p0)
}
 0x143   : > { %s981_s11 = scalar_lea.hbm %s1240_s30, 256  ;;  %s985_s28 = scalar_lea.hbm %s1309_s2, 512 }
 0x144   : > { %p982_p5 = scmp.ne.s32.totalorder %s1240_s30, %s981_s11  ;;  %p986_p4 = scmp.lt.s32.totalorder %s1240_s30, %s1309_s2 }
 0x145   : > { %p987_p6 = scmp.lt.s32.totalorder %s985_s28, %s981_s11 }
 0x146   : > { %p983_p9 = pnand %p982_p5, %p1326_p11 }
 0x147   : > { %p988_p8 = por %p987_p6, %p986_p4 }
 0x148   : > { %p984_p1 = pneg %p983_p9 }
 0x14a   : > { %p989_p3 = pnand %p988_p8, %p984_p1 }
 0x14c   : > { %992 = shalt.err (!%p989_p3)
}
 0x14d   : > { %s1074_s20 = smov 64   ;;  %s1075_s21 = smov 4   ;;  %v538_v59 = vadd.f32 %v537_v57, %v536_v55  ;;  %v550_v60 = vrot.slane %v549_v58, 4  ;;  %vm556_vm2 = vcmask 1040384  }
 0x14e   : > { %824 = dma.vmem_to_hbm [thread:$0]  (%p1326_p11), %s1235_s17, 256, %s1240_s30, %s560_s4, %s1074_s20, %s1074_s20, %s1075_s21  }
 0x14f   : > { %v539_v61 = vrot.slane %v538_v59, 2  ;;  %v551_v62 = vadd.f32 %v550_v60, %v549_v58  ;;  %s716_s23 = sshll.u32 %s1213_s26, 1  ;;  %s752_s25 = sshll.u32 %s1118_s16, 5 }
 0x150   : > { %s215_s7 = scalar_lea.vmem [#allocation8], %s716_s23  ;;  %s1270_s30 = scalar_lea.hbm %s1310_s3, %s752_s25 }
 0x151   : > { %v540_v63 = vadd.f32 %v539_v61, %v538_v59  ;;  %v552_v0 = vrot.slane %v551_v62, 2  ;;  %s594_s8 = sshll.u32 %s215_s7, 4  ;;  %s565_s4 = scalar_lea.sflag [#allocation9], %s1213_s26  ;;  %s595_s8 = int_to_ptr.vmem [resolvable:$true] %s594_s8 }
 0x152   : > { %s993_s10 = scalar_lea.vmem %s595_s8, 32  ;;  %s1076_s16 = smov [#allocation8]  }
 0x153   : > { %v541_v1 = vrot.slane %v540_v63, 1  ;;  %v553_v2 = vadd.f32 %v552_v0, %v551_v62  ;;  %p994_p7 = scmp.ne.s32.totalorder %s595_s8, %s993_s10  ;;  %s997_s11 = sshll.u32 %s1076_s16, 4  ;;  %s998_s11 = int_to_ptr.vmem [resolvable:$false] %s997_s11 }
 0x154   : > { %s999_s22 = scalar_lea.vmem %s998_s11, 64  ;;  %p1000_p2 = scmp.lt.s32.totalorder %s595_s8, %s998_s11 }
 0x155   : > { %v554_v3 = vrot.slane %v553_v2, 1  ;;  %v542_v4 = vadd.f32 %v541_v1, %v540_v63  ;;  %p995_p12 = pnand %p994_p7, %p1326_p11  ;;  %p1001_p13 = scmp.lt.s32.totalorder %s999_s22, %s993_s10 }
 0x157   : > { %v555_v5 = vadd.f32 %v554_v3, %v553_v2  ;;  %p996_p10 = pneg %p995_p12  ;;  %p1002_p0 = por %p1001_p13, %p1000_p2 }
 0x159   : > { %v557_v6 = vsel %vm556_vm2, %v542_v4, %v555_v5  ;;  %p1003_p5 = pnand %p1002_p0, %p996_p10 }
 0x15a   : > { %558 = vst [vmem:[%s215_s7] sm:$0x3] %v557_v6 }
 0x15b   : > { %1006 = shalt.err (!%p1003_p5)
}
 0x15c   : > { %s1007_s27 = scalar_lea.hbm %s1270_s30, 32  ;;  %s1011_s29 = scalar_lea.hbm %s1310_s3, 64 }
 0x15d   : > { %p1008_p9 = scmp.ne.s32.totalorder %s1270_s30, %s1007_s27  ;;  %p1012_p6 = scmp.lt.s32.totalorder %s1270_s30, %s1310_s3 }
 0x15e   : > { %p1013_p8 = scmp.lt.s32.totalorder %s1011_s29, %s1007_s27 }
 0x15f   : > { %p1009_p1 = pnand %p1008_p9, %p1326_p11 }
 0x160   : > { %p1014_p3 = por %p1013_p8, %p1012_p6 }
 0x161   : > { %p1010_p4 = pneg %p1009_p1 }
 0x163   : > { %p1015_p7 = pnand %p1014_p3, %p1010_p4 }
 0x165   : > { %1018 = shalt.err (!%p1015_p7)
}
 0x166   : > { %825 = dma.vmem_to_hbm [thread:$0]  (%p1326_p11), %s595_s8, 32, %s1270_s30, %s565_s4  }
 0x167 PF: > { %s606_s21 = sand.u32 1, %s1053_s12   ;;  %p1327_p12 = scmp.ne.s32.totalorder %s1316_s19, 0 }
 0x168   : > { %p1328_p10 = scmp.ge.s32.totalorder %s1065_s15, 2  ;;  %s607_s23 = scalar_lea.sflag [#allocation4], %s606_s21 }
 0x16a   : > { %p837_p2 = pnand %p1328_p10, %p1327_p12 }
 0x16c   : > { %p838_p13 = pneg %p837_p2 }
 0x16e   : > { %1044 = dma.done.wait (%p838_p13), %s607_s23, 256  }
 0x16f   : > { %1046 = vsyncadd (%p838_p13), %s607_s23, 4294967040  ;;  %s616_s25 = scalar_lea.sflag [#allocation9], %s606_s21 }
 0x170   : > { %1048 = dma.done.wait (%p838_p13), %s616_s25, 32  }
 0x171   : > { %1050 = vsyncadd (%p838_p13), %s616_s25, 4294967264  ;;  %p21_p11 = scmp.ge.s32.totalorder %s1151_s24, 4   ;;  %s1329_s12 = smov %s1057_s13 }
 0x172   : > { %s1330_s13 = smov %s1061_s14  ;;  %s1331_s14 = smov %s1168_s5 }
 0x173   : > { %s1332_s15 = smov %s1151_s24  ;;  %23 = sbr.rel (!%p21_p11) target bundleno = 8 (0x8), region = 94 }
 0x178   :  { %621 = vsyncpa [#allocation3], 1 }
 0x179   :  { %623 = vsyncpa [#allocation3 + $0x1], 1 }
 0x17a   :  { %624 = vsyncpa [#allocation6], 1 }
 0x17b   :  { %625 = vsyncpa [#allocation4], 1 }
 0x17c   :  { %627 = vsyncpa [#allocation4 + $0x1], 1 }
 0x17d   :  { %628 = vsyncpa [#allocation9], 1 }
 0x17e   :  { %630 = vsyncpa [#allocation9 + $0x1], 1 }

</bundles_post_ra>
